<compile_context>
chip_gen: v7x
topology: tpu7x:2x2x1
jax: 0.10.0
libtpu: 0.0.40
codegen_flags: <defaults>
</compile_context>

<pallas_src>
import functools

import jax
import jax.numpy as jnp
from jax.experimental import pallas as pl
from jax.experimental.pallas import tpu as pltpu

_LANE = 128


def _round_up(n, m):
    return n + (-n) % m


def _pad_axis(a, axis, target):
    pad = target - a.shape[axis]
    if pad == 0:
        return a
    widths = [(0, 0)] * a.ndim
    widths[axis] = (0, pad)
    return jnp.pad(a, widths)


def prepare_mlp_params(params, mxu_dtype=None):
    """Pad + cast weights ONCE (hoisted out of the per-call forward).

    params: sequence of (W, b); W is (fan_in, fan_out) (torch W transposed),
            b is (fan_out,).
    mxu_dtype: dtype for the MXU inputs.  bfloat16 is recommended on v5e, v6e
               and v7x (halves weight/x VMEM+HBM bytes; the MXU is natively
               bf16 and accumulation / bias-add / tanh stay float32).
    Returns a flat tuple (W0p, b0p, W1p, b1p, ...) ready for mlp_forward.
    """
    mxu_dtype = jnp.dtype(params[0][0].dtype) if mxu_dtype is None else jnp.dtype(mxu_dtype)
    num_layers = len(params)
    wb = []
    prev_width = None  # padded width of the previous layer's activation
    for l, (w, b) in enumerate(params):
        fan_in, fan_out = w.shape
        if l == 0:
            fi_pad = fan_in                     # x is passed unpadded along K
        else:
            assert fan_in == params[l - 1][0].shape[1], "layer dims must chain"
            fi_pad = prev_width                 # match padded previous activation
        # Last layer keeps its true fan_out -> output written at n_out lanes.
        fo_pad = fan_out if l == num_layers - 1 else _round_up(fan_out, _LANE)
        wp = _pad_axis(_pad_axis(w, 0, fi_pad), 1, fo_pad).astype(mxu_dtype)
        bp = _pad_axis(b.reshape(1, fan_out), 1, fo_pad).astype(jnp.float32)
        wb += [wp, bp]
        prev_width = fo_pad
    return tuple(wb)


def _choose_tm(M, mxu_dtype):
    """Batch tile: large (<=512) to amortize per-step overhead & feed the MXU,
    but small enough that the grid has >= 2 tiles (both v7x TensorCores)."""
    itemsize = jnp.dtype(mxu_dtype).itemsize
    align = {4: 8, 2: 16, 1: 32}.get(itemsize, 8)
    tm = _round_up(pl.cdiv(M, 2), align)
    return max(align, min(512, tm))


def _fused_mlp_kernel(x_ref, *rest, num_layers):
    """o = tanh(...tanh(tanh(x @ W0 + b0) @ W1 + b1)... @ Wn + bn), all in VMEM."""
    if num_layers > 1:
        *wb_refs, o_ref, h_ref = rest          # h_ref: VMEM scratch for activations
    else:
        *wb_refs, o_ref = rest
        h_ref = None
    mxu_dtype = wb_refs[0].dtype

    h = x_ref[...].astype(mxu_dtype)           # cast in VMEM (no HBM cast pass)
    for l in range(num_layers):
        w_ref = wb_refs[2 * l]
        b_ref = wb_refs[2 * l + 1]
        acc = jnp.dot(h, w_ref[...], preferred_element_type=jnp.float32)
        act = jnp.tanh(acc + b_ref[...])        # f32 bias-add + tanh on all gens
        if l < num_layers - 1:
            width = w_ref.shape[1]
            # Stage through VMEM scratch: bounds vreg live ranges at large tm.
            h_ref[:, :width] = act.astype(mxu_dtype)
            h = h_ref[:, :width]
        else:
            o_ref[...] = act.astype(o_ref.dtype)


@functools.partial(jax.jit, static_argnames=("tm",))
def mlp_forward(x, wb, *, tm=None):
    """Fused MLP forward.

    x:  (M, K0); wb: flat tuple from prepare_mlp_params.
    All layer weights are VMEM-resident (constant-index, single-buffered
    blocks); intermediates never touch HBM.
    """
    M, K0 = x.shape
    num_layers = len(wb) // 2
    ws = [wb[2 * l] for l in range(num_layers)]
    bs = [wb[2 * l + 1] for l in range(num_layers)]
    mxu_dtype = ws[0].dtype
    n_out = ws[-1].shape[1]
    out_dtype = x.dtype

    if tm is None:
        tm = _choose_tm(M, mxu_dtype)
    m_pad = _round_up(M, tm)
    xp = _pad_axis(x, 0, m_pad)                 # no-op when M % tm == 0

    # ---- block specs ----
    in_specs = [pl.BlockSpec((tm, K0), lambda i: (i, 0))]
    const_map = lambda i: (0, 0)
    for l in range(num_layers):
        # Constant-index blocks: DMA'd once, VMEM-resident, single-buffered.
        in_specs.append(pl.BlockSpec(ws[l].shape, const_map,
                                     pipeline_mode=pl.Buffered(1)))
        in_specs.append(pl.BlockSpec(bs[l].shape, const_map,
                                     pipeline_mode=pl.Buffered(1)))
    out_spec = pl.BlockSpec((tm, n_out), lambda i: (i, 0))

    max_inter = max((w.shape[1] for w in ws[:-1]), default=0)
    scratch_shapes = ([pltpu.VMEM((tm, max_inter), mxu_dtype)]
                      if num_layers > 1 else [])

    # ---- VMEM budget from actual resident sizes (clamped: safe on v7x 64 MiB) ----
    wb_bytes = sum(int(a.size) * a.dtype.itemsize for a in wb)
    tile_bytes = (2 * tm * K0 * x.dtype.itemsize
                  + 2 * tm * n_out * jnp.dtype(out_dtype).itemsize)
    scratch_bytes = tm * max_inter * jnp.dtype(mxu_dtype).itemsize if num_layers > 1 else 0
    needed = wb_bytes + tile_bytes + scratch_bytes
    vmem_limit = int(min(max(2 * needed + (8 << 20), 32 << 20), 64 << 20))
    # TODO(synk): if `needed` exceeds ~56 MiB (v7x has only 64 MiB VMEM), fall
    # back to a layer/K-pipelined variant instead of keeping all weights resident.

    kernel = functools.partial(_fused_mlp_kernel, num_layers=num_layers)

    out = pl.pallas_call(
        kernel,
        out_shape=jax.ShapeDtypeStruct((m_pad, n_out), out_dtype),
        grid_spec=pltpu.PrefetchScalarGridSpec(
            num_scalar_prefetch=0,
            grid=(m_pad // tm,),
            in_specs=in_specs,
            out_specs=out_spec,
            scratch_shapes=scratch_shapes,
        ),
        compiler_params=pltpu.CompilerParams(
            dimension_semantics=("parallel",),
            vmem_limit_bytes=vmem_limit,
        ),
    )(xp, *wb)

    return out if m_pad == M else out[:M]


def init_mlp_params(key, num_layers, input_size, output_size, mid_size=128):
    """Deterministic init mirroring torch.nn.Linear default (U[-1/sqrt(fan_in), +])."""
    dims = []
    for i in range(num_layers):
        if num_layers == 1:
            dims.append((input_size, output_size))
            break
        if i == 0:
            dims.append((input_size, mid_size))
        elif i == num_layers - 1:
            dims.append((mid_size, output_size))
        else:
            dims.append((mid_size, mid_size))

    params = []
    for (fan_in, fan_out) in dims:
        key, kw, kb = jax.random.split(key, 3)
        bound = 1.0 / jnp.sqrt(jnp.float32(fan_in))
        w = jax.random.uniform(kw, (fan_in, fan_out), jnp.float32, -bound, bound)
        b = jax.random.uniform(kb, (fan_out,), jnp.float32, -bound, bound)
        params.append((w, b))
    return params


def mlp_reference(x, params):
    tmp = x
    for (w, b) in params:
        tmp = jnp.tanh(tmp @ w + b)
    return tmp


if __name__ == "__main__":
    key = jax.random.PRNGKey(0)

    num_layers = 3
    batch = 16
    input_size = 64
    mid_size = 128
    output_size = 32

    key, kx = jax.random.split(key)
    x = jax.random.normal(kx, (batch, input_size), jnp.float32)
    params = tuple((w, b) for (w, b) in
                   init_mlp_params(key, num_layers, input_size, output_size, mid_size))
    ref = mlp_reference(x, params)

    # f32 MXU path: exact vs reference.  (prepare once, reuse across calls)
    wb_f32 = prepare_mlp_params(params)
    out = jax.block_until_ready(mlp_forward(x, wb_f32))
    assert out.shape == (batch, output_size)
    assert jnp.allclose(out, ref, atol=1e-5, rtol=1e-5), "f32 mismatch vs reference"

    # bf16 MXU path (recommended on v5e/v6e/v7x): f32 accumulate + f32 bias/tanh.
    # Tolerance reflects bf16 quantization of x and W before the MXU.
    wb_bf16 = prepare_mlp_params(params, mxu_dtype=jnp.bfloat16)
    out_bf16 = jax.block_until_ready(mlp_forward(x, wb_bf16))
    assert out_bf16.shape == (batch, output_size)
    assert jnp.allclose(out_bf16, ref, atol=5e-2), "bf16 mismatch vs reference"

    # Single-layer (no-scratch) path.
    params1 = tuple((w, b) for (w, b) in
                    init_mlp_params(key, 1, input_size, output_size, mid_size))
    ref1 = mlp_reference(x, params1)
    out1 = jax.block_until_ready(mlp_forward(x, prepare_mlp_params(params1)))
    assert out1.shape == (batch, output_size)
    assert jnp.allclose(out1, ref1, atol=1e-5, rtol=1e-5), "1-layer mismatch vs reference"

    print("KERNEL_OK")
</pallas_src>

<mosaic_0001>
module attributes {stable_mosaic.version = 11 : i64} {
  func.func @_fused_mlp_kernel(%arg0: i32, %arg1: memref<8x64xf32, #tpu.memory_space<vmem>>, %arg2: memref<64x128xf32, #tpu.memory_space<vmem>>, %arg3: memref<1x128xf32, #tpu.memory_space<vmem>>, %arg4: memref<128x128xf32, #tpu.memory_space<vmem>>, %arg5: memref<1x128xf32, #tpu.memory_space<vmem>>, %arg6: memref<128x32xf32, #tpu.memory_space<vmem>>, %arg7: memref<1x32xf32, #tpu.memory_space<vmem>>, %arg8: memref<8x32xf32, #tpu.memory_space<vmem>>, %arg9: memref<8x128xf32, #tpu.memory_space<vmem>>) attributes {dimension_semantics = [#tpu.dimension_semantics<parallel>], iteration_bounds = array<i64: 2>, scalar_prefetch = 0 : i64, scratch_operands = 1 : i64, tpu.core_type = #tpu.core_type<tc>, window_params = [{transform_indices = @transform_0, window_bounds = array<i64: 8, 64>}, {pipeline_mode = #tpu.pipeline_mode<synchronous>, transform_indices = @transform_1, window_bounds = array<i64: 64, 128>}, {pipeline_mode = #tpu.pipeline_mode<synchronous>, transform_indices = @transform_2, window_bounds = array<i64: 1, 128>}, {pipeline_mode = #tpu.pipeline_mode<synchronous>, transform_indices = @transform_3, window_bounds = array<i64: 128, 128>}, {pipeline_mode = #tpu.pipeline_mode<synchronous>, transform_indices = @transform_4, window_bounds = array<i64: 1, 128>}, {pipeline_mode = #tpu.pipeline_mode<synchronous>, transform_indices = @transform_5, window_bounds = array<i64: 128, 32>}, {pipeline_mode = #tpu.pipeline_mode<synchronous>, transform_indices = @transform_6, window_bounds = array<i64: 1, 32>}, {transform_indices = @transform_7, window_bounds = array<i64: 8, 32>}]} {
    %c0 = arith.constant 0 : index
    %c0_0 = arith.constant 0 : index
    %0 = vector.load %arg1[%c0, %c0_0] : memref<8x64xf32, #tpu.memory_space<vmem>>, vector<8x64xf32>
    %c0_1 = arith.constant 0 : index
    %c0_2 = arith.constant 0 : index
    %1 = vector.load %arg2[%c0_1, %c0_2] : memref<64x128xf32, #tpu.memory_space<vmem>>, vector<64x128xf32>
    %cst = arith.constant dense<0.000000e+00> : vector<8x128xf32>
    %2 = tpu.matmul %0, %1, %cst {dimension_numbers = #tpu.dot_dimension_numbers<[1], [0], [0], [1], [0, 0, 1, 1], [], []>} : vector<8x64xf32>, vector<64x128xf32>, vector<8x128xf32> -> vector<8x128xf32>
    %c0_3 = arith.constant 0 : index
    %c0_4 = arith.constant 0 : index
    %3 = vector.load %arg3[%c0_3, %c0_4] : memref<1x128xf32, #tpu.memory_space<vmem>>, vector<1x128xf32>
    %4 = vector.broadcast %3 : vector<1x128xf32> to vector<8x128xf32>
    %5 = arith.addf %2, %4 : vector<8x128xf32>
    %6 = math.tanh %5 : vector<8x128xf32>
    %c0_5 = arith.constant 0 : index
    %c0_6 = arith.constant 0 : index
    %7 = vector.load %arg9[%c0_5, %c0_6] : memref<8x128xf32, #tpu.memory_space<vmem>>, vector<8x128xf32>
    tpu.vector_store %arg9[%c0_5, %c0_6], %6 {strides = array<i32>} : memref<8x128xf32, #tpu.memory_space<vmem>>, vector<8x128xf32>,
    %c0_7 = arith.constant 0 : index
    %c0_8 = arith.constant 0 : index
    %8 = vector.load %arg9[%c0_7, %c0_8] : memref<8x128xf32, #tpu.memory_space<vmem>>, vector<8x128xf32>
    %c0_9 = arith.constant 0 : index
    %c0_10 = arith.constant 0 : index
    %9 = vector.load %arg4[%c0_9, %c0_10] : memref<128x128xf32, #tpu.memory_space<vmem>>, vector<128x128xf32>
    %cst_11 = arith.constant dense<0.000000e+00> : vector<8x128xf32>
    %10 = tpu.matmul %8, %9, %cst_11 {dimension_numbers = #tpu.dot_dimension_numbers<[1], [0], [0], [1], [0, 0, 1, 1], [], []>} : vector<8x128xf32>, vector<128x128xf32>, vector<8x128xf32> -> vector<8x128xf32>
    %c0_12 = arith.constant 0 : index
    %c0_13 = arith.constant 0 : index
    %11 = vector.load %arg5[%c0_12, %c0_13] : memref<1x128xf32, #tpu.memory_space<vmem>>, vector<1x128xf32>
    %12 = vector.broadcast %11 : vector<1x128xf32> to vector<8x128xf32>
    %13 = arith.addf %10, %12 : vector<8x128xf32>
    %14 = math.tanh %13 : vector<8x128xf32>
    %c0_14 = arith.constant 0 : index
    %c0_15 = arith.constant 0 : index
    %15 = vector.load %arg9[%c0_14, %c0_15] : memref<8x128xf32, #tpu.memory_space<vmem>>, vector<8x128xf32>
    tpu.vector_store %arg9[%c0_14, %c0_15], %14 {strides = array<i32>} : memref<8x128xf32, #tpu.memory_space<vmem>>, vector<8x128xf32>,
    %c0_16 = arith.constant 0 : index
    %c0_17 = arith.constant 0 : index
    %16 = vector.load %arg9[%c0_16, %c0_17] : memref<8x128xf32, #tpu.memory_space<vmem>>, vector<8x128xf32>
    %c0_18 = arith.constant 0 : index
    %c0_19 = arith.constant 0 : index
    %17 = vector.load %arg6[%c0_18, %c0_19] : memref<128x32xf32, #tpu.memory_space<vmem>>, vector<128x32xf32>
    %cst_20 = arith.constant dense<0.000000e+00> : vector<8x32xf32>
    %18 = tpu.matmul %16, %17, %cst_20 {dimension_numbers = #tpu.dot_dimension_numbers<[1], [0], [0], [1], [0, 0, 1, 1], [], []>} : vector<8x128xf32>, vector<128x32xf32>, vector<8x32xf32> -> vector<8x32xf32>
    %c0_21 = arith.constant 0 : index
    %c0_22 = arith.constant 0 : index
    %19 = vector.load %arg7[%c0_21, %c0_22] : memref<1x32xf32, #tpu.memory_space<vmem>>, vector<1x32xf32>
    %20 = vector.broadcast %19 : vector<1x32xf32> to vector<8x32xf32>
    %21 = arith.addf %18, %20 : vector<8x32xf32>
    %22 = math.tanh %21 : vector<8x32xf32>
    %c0_23 = arith.constant 0 : index
    %c0_24 = arith.constant 0 : index
    %23 = vector.load %arg8[%c0_23, %c0_24] : memref<8x32xf32, #tpu.memory_space<vmem>>, vector<8x32xf32>
    tpu.vector_store %arg8[%c0_23, %c0_24], %22 {strides = array<i32>} : memref<8x32xf32, #tpu.memory_space<vmem>>, vector<8x32xf32>,
    return
  }
  func.func @transform_0(%arg0: i32) -> (i32, i32) {
    %c0_i32 = arith.constant 0 : i32
    %c0_i32_0 = arith.constant 0 : i32
    return %arg0, %c0_i32 : i32, i32
  }
  func.func @transform_1(%arg0: i32) -> (i32, i32) {
    %c0_i32 = arith.constant 0 : i32
    %c0_i32_0 = arith.constant 0 : i32
    %c0_i32_1 = arith.constant 0 : i32
    return %c0_i32, %c0_i32_0 : i32, i32
  }
  func.func @transform_2(%arg0: i32) -> (i32, i32) {
    %c0_i32 = arith.constant 0 : i32
    %c0_i32_0 = arith.constant 0 : i32
    %c0_i32_1 = arith.constant 0 : i32
    return %c0_i32, %c0_i32_0 : i32, i32
  }
  func.func @transform_3(%arg0: i32) -> (i32, i32) {
    %c0_i32 = arith.constant 0 : i32
    %c0_i32_0 = arith.constant 0 : i32
    %c0_i32_1 = arith.constant 0 : i32
    return %c0_i32, %c0_i32_0 : i32, i32
  }
  func.func @transform_4(%arg0: i32) -> (i32, i32) {
    %c0_i32 = arith.constant 0 : i32
    %c0_i32_0 = arith.constant 0 : i32
    %c0_i32_1 = arith.constant 0 : i32
    return %c0_i32, %c0_i32_0 : i32, i32
  }
  func.func @transform_5(%arg0: i32) -> (i32, i32) {
    %c0_i32 = arith.constant 0 : i32
    %c0_i32_0 = arith.constant 0 : i32
    %c0_i32_1 = arith.constant 0 : i32
    return %c0_i32, %c0_i32_0 : i32, i32
  }
  func.func @transform_6(%arg0: i32) -> (i32, i32) {
    %c0_i32 = arith.constant 0 : i32
    %c0_i32_0 = arith.constant 0 : i32
    %c0_i32_1 = arith.constant 0 : i32
    return %c0_i32, %c0_i32_0 : i32, i32
  }
  func.func @transform_7(%arg0: i32) -> (i32, i32) {
    %c0_i32 = arith.constant 0 : i32
    %c0_i32_0 = arith.constant 0 : i32
    return %arg0, %c0_i32 : i32, i32
  }
}

</mosaic_0001>

<bundles_post_ra>
// kernel: mlp_forward.1
= control target key start
LH: loop header
LB: loop body
LE: loop exit
PB: predicated region body
PF: predicated region fallthrough
CT: control target
= control target key end

     0   :  { %12 = vsyncpa [#allocation4], 0  ;;  %s1334_s0 = inlined_call_operand.vmem [shape: f32[16,64], index: 0, kind: input, shape index: {}]   ;;  %s1335_s1 = inlined_call_operand.hbm [shape: f32[64,128], index: 1, kind: input, shape index: {}]   ;;  %s1336_s2 = inlined_call_operand.vmem [shape: f32[1,128], index: 2, kind: input, shape index: {}]   ;;  %s1337_s3 = inlined_call_operand.vmem [shape: f32[128,128], index: 3, kind: input, shape index: {}]   ;;  %s1338_s4 = inlined_call_operand.vmem [shape: f32[1,128], index: 4, kind: input, shape index: {}]   ;;  %s1339_s5 = inlined_call_operand.vmem [shape: f32[128,32], index: 5, kind: input, shape index: {}]   ;;  %s1340_s6 = inlined_call_operand.vmem [shape: f32[1,32], index: 6, kind: input, shape index: {}]   ;;  %s1341_s7 = inlined_call_operand.hbm [shape: f32[16,32], index: 7, kind: output, shape index: {}]  }
   0x1   :  { %13 = vsyncpa [#allocation5], 0 }
   0x2   :  { %15 = vsyncpa [#allocation5 + $0x1], 0  ;;  %s1071_s24 = smov 0   ;;  %s1073_s25 = smov 0  }
   0x3   :  { %s1075_s26 = smov 0   ;;  %s1077_s27 = smov 0  }
   0x4 LB: > { %s1092_s28 = sadd.s32 4294967295, %s1022_s27   ;;  %s659_s29 = sadd.s32 4294967294, %s1022_s27   ;;  %s1022_s27 = sphi %s1077_s27, %s1357_s27   ;;  %s1018_s26 = sphi %s1075_s26, %s1356_s26   ;;  %s1014_s25 = sphi %s1073_s25, %s1355_s25   ;;  %s1010_s24 = sphi %s1071_s24, %s1354_s24  }
   0x5   : > { %s1096_s30 = sadd.s32 1, %s1022_s27   ;;  %s180_s8 = sadd.s32 1, %s1018_s26 }
   0x6   : > { %s177_s9 = ssub.s32 %s1022_s27, %s1096_s30  ;;  %p190_p0 = scmp.ne.s32.totalorder %s1018_s26, %s1014_s25 }
   0x7   : > { %p178_p1 = scmp.eq.s32.totalorder %s177_s9, 0  ;;  %p191_p2 = scmp.eq.s32.totalorder %s1092_s28, 1 }
   0x8   : > { %p196_p3 = scmp.ne.s32.totalorder %s1014_s25, %s1010_s24  ;;  %p197_p4 = scmp.eq.s32.totalorder %s659_s29, 1 }
   0x9   : > { %s1107_s10 = scalar_select %p178_p1, %s1018_s26, %s180_s8  }
   0xa   : > { %p1109_p5 = por %p191_p2, %p190_p0  ;;  %p1113_p6 = por %p197_p4, %p196_p3 }
   0xb   : > { %p660_p7 = scmp.ge.s32.totalorder %s1022_s27, 1  ;;  %p204_p8 = scmp.lt.s32.totalorder %s1022_s27, 3 }
   0xc   : > { %s1345_s11 = scalar_select %p1109_p5, 1, 0 }
   0xd   : > { %s1346_s12 = scalar_select %p1113_p6, 1, 0 }
   0xe   : > { %p1342_p9 = scmp.eq.s32.totalorder %s1092_s28, 0  ;;  %p1120_p10 = pnand %p660_p7, %p204_p8 }
   0xf   : > { %s1024_s14 = smov [#allocation3]   ;;  %s928_s19 = scalar_lea.hbm %s1335_s1, 1024 }
  0x10   : > { %s1347_s13 = scalar_select %p1120_p10, 1, 0 }
  0x11   : > { %s216_s15 = sshll.u32 %s1024_s14, 4  ;;  %p873_p11 = pneg %p1120_p10  ;;  %s217_s15 = int_to_ptr.vmem [resolvable:$true] %s216_s15 }
  0x12   : > { %p929_p13 = scmp.ne.s32.totalorder %s1335_s1, %s928_s19  ;;  %p935_p3 = scmp.lt.u32.totalorder %s928_s19, %s1335_s1 }
  0x13   : > { %p1128_p12 = pnand %p1342_p9, %p873_p11 }
  0x15   : > { %p930_p0 = pneg %p1128_p12 }
  0x17   : > { %p931_p1 = pnand %p930_p0, %p929_p13 }
  0x19   : > { %p932_p2 = pneg %p931_p1 }
  0x1b   : > { %p937_p4 = pnand %p935_p3, %p932_p2 }
  0x1d   : > { %940 = shalt.err (!%p937_p4)
}
  0x1e   : > { %s941_s29 = scalar_lea.vmem %s217_s15, 1024  ;;  %p949_p9 = scmp.lt.s32.totalorder %s217_s15, %s217_s15 }
  0x1f   : > { %p942_p7 = scmp.ne.s32.totalorder %s217_s15, %s941_s29  ;;  %p950_p6 = scmp.lt.s32.totalorder %s941_s29, %s941_s29 }
  0x21   : > { %p944_p8 = pnand %p942_p7, %p930_p0  ;;  %p951_p5 = por %p950_p6, %p949_p9 }
  0x23   : > { %p945_p11 = pneg %p944_p8 }
  0x25   : > { %p952_p10 = pnand %p951_p5, %p945_p11 }
  0x27   : > { %955 = shalt.err (!%p952_p10)
}
  0x28   : > { %s1025_s8 = smov 128   ;;  %s1026_s9 = smov 8  }
  0x29   : > { %876 = dma.hbm_to_vmem [thread:$0]  (!%p1128_p12), %s1335_s1, 1024, %s217_s15, [#allocation4], %s1025_s8, %s1025_s8, %s1026_s9  }
  0x2a   : > { %p1349_p13 = scmp.ne.s32.totalorder %s1347_s13, 0 }
  0x2b   : > { %p1350_p1 = scmp.eq.s32.totalorder (!%p1349_p13), %s1092_s28, 0 }
  0x2c   : > { %254 = sbr.rel (%p1349_p13) target bundleno = 759 (0x2f7), region = 48 }
  0x33   : > { %1001 = dma.done.wait (%p1350_p1), [#allocation4], 1024   ;;  %p1351_p0 = pmov %p1350_p1 }
  0x34   : > { %v1027_v0 = vmov 0.0|0.0   ;;  %vm1028_vm0 = vmmov 0   ;;  %v1029_v1 = vmov 0.0   ;;  %v290_v2 = vld [vmem:[#allocation3] sm:$0xff]  ;;  %v291_v3 = vld [vmem:[#allocation3 + $0x8] sm:$0xff]  ;;  %v292_v4 = vld [vmem:[#allocation3 + $0x10] sm:$0xff] }
  0x35   : > { %1003 = vsyncadd (%p1351_p0), [#allocation4], 4294966272  ;;  %807 = vmatprep.subr.bf16.mxu0 %v1027_v0  ;;  %734 = vmatprep.mubr.msk.f32.mxu0 %vm1028_vm0, %v1029_v1  ;;  %v808_v5 = vpack.c.bf16 %v291_v3, %v290_v2  ;;  %v293_v6 = vld [vmem:[#allocation3 + $0x18] sm:$0xff]  ;;  %p285_p5 = scmp.lt.s32.totalorder %s1092_s28, 1  ;;  %v382_v8 = vld [vmem:[%s1337_s3] sm:$0xff]  ;;  %vm305_vm1 = vcmask 523264  }
  0x36   : > { %819 = vmatprep.subr.bf16.mxu1 %v1027_v0  ;;  %769 = vmatprep.mubr.msk.f32.mxu1 %vm1028_vm0, %v1029_v1  ;;  %v811_v7 = vpack.c.bf16 %v293_v6, %v292_v4  ;;  %v383_v9 = vld [vmem:[%s1337_s3 + $0x8] sm:$0xff]  ;;  %v384_v10 = vld [vmem:[%s1337_s3 + $0x10] sm:$0xff]  ;;  %v294_v11 = vld [vmem:[#allocation3 + $0x20] sm:$0xff]  ;;  %s282_s20 = sand.u32 1, %s1014_s25   ;;  %s672_s22 = sshll.u32 %s1092_s28, 7  ;;  %vm572_vm2 = vcmask 261120  }
  0x37   : > { %809 = vmatpush3.bf16.msra.mxu0 %v808_v5  ;;  %v295_v12 = vld [vmem:[#allocation3 + $0x28] sm:$0xff]  ;;  %v820_v13 = vpack.c.bf16 %v383_v9, %v382_v8  ;;  %v385_v14 = vld [vmem:[%s1337_s3 + $0x18] sm:$0xff]  ;;  %s286_s23 = scalar_select %p285_p5, %s1092_s28, 1  ;;  %v386_v17 = vld [vmem:[%s1337_s3 + $0x20] sm:$0xff] }
  0x38   : > { %810 = vmatprep.subr.bf16.mxu0 %v1027_v0  ;;  %v823_v15 = vpack.c.bf16 %v385_v14, %v384_v10  ;;  %v814_v16 = vpack.c.bf16 %v295_v12, %v294_v11  ;;  %v387_v18 = vld [vmem:[%s1337_s3 + $0x28] sm:$0xff]  ;;  %v296_v19 = vld [vmem:[#allocation3 + $0x30] sm:$0xff]  ;;  %v297_v20 = vld [vmem:[#allocation3 + $0x38] sm:$0xff]  ;;  %s1292_s14 = scalar_lea.hbm %s1341_s7, %s672_s22  ;;  %p1352_p9 = scmp.ne.s32.totalorder %s1345_s11, 0 }
  0x39   : > { %821 = vmatpush3.bf16.msra.mxu1 %v820_v13  ;;  %s666_s17 = sshll.u32 %s286_s23, 3  ;;  %v826_v21 = vpack.c.bf16 %v387_v18, %v386_v17  ;;  %v817_v22 = vpack.c.bf16 %v297_v20, %v296_v19  ;;  %v388_v23 = vld [vmem:[%s1337_s3 + $0x30] sm:$0xff]  ;;  %v389_v24 = vld [vmem:[%s1337_s3 + $0x38] sm:$0xff]  ;;  %v390_v27 = vld [vmem:[%s1337_s3 + $0x40] sm:$0xff]  ;;  %s1030_s28 = smov [#allocation6]  }
  0x3a   : > { %822 = vmatprep.subr.bf16.mxu1 %v1027_v0  ;;  %s288_s21 = scalar_lea.vmem %s1334_s0, %s666_s17  ;;  %v829_v25 = vpack.c.bf16 %v389_v24, %v388_v23  ;;  %v391_v28 = vld [vmem:[%s1337_s3 + $0x48] sm:$0xff]  ;;  %v392_v30 = vld [vmem:[%s1337_s3 + $0x50] sm:$0xff]  ;;  %v393_v31 = vld [vmem:[%s1337_s3 + $0x58] sm:$0xff]  ;;  %s575_s17 = scalar_lea.sflag [#allocation5], %s282_s20 }
  0x3b   : > { %812 = vmatpush3.bf16.msra.mxu0 %v811_v7  ;;  %v289_v26 = vld [vmem:[%s288_s21] sm:$0xff]  ;;  %v832_v29 = vpack.c.bf16 %v391_v28, %v390_v27  ;;  %v835_v32 = vpack.c.bf16 %v393_v31, %v392_v30  ;;  %v395_v34 = vld [vmem:[%s1337_s3 + $0x68] sm:$0xff]  ;;  %v396_v36 = vld [vmem:[%s1337_s3 + $0x70] sm:$0xff]  ;;  %s665_s21 = sshll.u32 %s282_s20, 3  ;;  %s960_s15 = sshll.u32 %s1030_s28, 4  ;;  %s961_s15 = int_to_ptr.vmem [resolvable:$false] %s960_s15 }
  0x3c   : > { %813 = vmatprep.subr.bf16.mxu0 %v1027_v0  ;;  %v394_v33 = vld [vmem:[%s1337_s3 + $0x60] sm:$0xff]  ;;  %v397_v37 = vld [vmem:[%s1337_s3 + $0x78] sm:$0xff]  ;;  %v479_v40 = vld [vmem:[%s1339_s5 + $0x8] sm:$0xff]  ;;  %s284_s23 = scalar_lea.vmem [#allocation6], %s665_s21  ;;  %s962_s16 = scalar_lea.vmem %s961_s15, 256 }
  0x3d   : > { %824 = vmatpush3.bf16.msra.mxu1 %v823_v15  ;;  %v838_v35 = vpack.c.bf16 %v395_v34, %v394_v33  ;;  %v841_v38 = vpack.c.bf16 %v397_v37, %v396_v36  ;;  %v478_v39 = vld [vmem:[%s1339_s5] sm:$0xff]  ;;  %v480_v41 = vld [vmem:[%s1339_s5 + $0x10] sm:$0xff]  ;;  %v481_v43 = vld [vmem:[%s1339_s5 + $0x18] sm:$0xff]  ;;  %s588_s29 = sshll.u32 %s284_s23, 4  ;;  %s1294_s29 = int_to_ptr.vmem [resolvable:$true] %s588_s29 }
  0x3e   : > { %825 = vmatprep.subr.bf16.mxu1 %v1027_v0  ;;  %v844_v42 = vpack.c.bf16 %v479_v40, %v478_v39  ;;  %v847_v44 = vpack.c.bf16 %v481_v43, %v480_v41  ;;  %v482_v45 = vld [vmem:[%s1339_s5 + $0x20] sm:$0xff]  ;;  %v483_v46 = vld [vmem:[%s1339_s5 + $0x28] sm:$0xff]  ;;  %v484_v48 = vld [vmem:[%s1339_s5 + $0x30] sm:$0xff]  ;;  %s956_s13 = scalar_lea.vmem %s1294_s29, 128  ;;  %p963_p2 = scmp.lt.s32.totalorder %s1294_s29, %s961_s15 }
  0x3f   : > { %815 = vmatpush3.bf16.msra.mxu0 %v814_v16  ;;  %v850_v47 = vpack.c.bf16 %v483_v46, %v482_v45  ;;  %v485_v49 = vld [vmem:[%s1339_s5 + $0x38] sm:$0xff]  ;;  %v486_v51 = vld [vmem:[%s1339_s5 + $0x40] sm:$0xff]  ;;  %v487_v52 = vld [vmem:[%s1339_s5 + $0x48] sm:$0xff]  ;;  %p957_p6 = scmp.ne.s32.totalorder %s1294_s29, %s956_s13  ;;  %p964_p3 = scmp.lt.s32.totalorder %s962_s16, %s956_s13 }
  0x40   : > { %816 = vmatprep.subr.bf16.mxu0 %v1027_v0  ;;  %v853_v50 = vpack.c.bf16 %v485_v49, %v484_v48  ;;  %v856_v53 = vpack.c.bf16 %v487_v52, %v486_v51  ;;  %v667_v54 = vld [vmem:[%s1336_s2] ss:$0 sm:$0xff]  ;;  %v488_v59 = vld [vmem:[%s1339_s5 + $0x50] sm:$0xff]  ;;  %v489_v60 = vld [vmem:[%s1339_s5 + $0x58] sm:$0xff] }
  0x41   : > { %827 = vmatpush3.bf16.msra.mxu1 %v826_v21  ;;  %v859_v61 = vpack.c.bf16 %v489_v60, %v488_v59  ;;  %v490_v62 = vld [vmem:[%s1339_s5 + $0x60] sm:$0xff]  ;;  %v491_v63 = vld [vmem:[%s1339_s5 + $0x68] sm:$0xff]  ;;  %v492_v2 = vld [vmem:[%s1339_s5 + $0x70] sm:$0xff]  ;;  %p958_p10 = pnand %p957_p6, %p1352_p9  ;;  %p965_p4 = por %p964_p3, %p963_p2 }
  0x42   : > { %828 = vmatprep.subr.bf16.mxu1 %v1027_v0  ;;  %v493_v3 = vld [vmem:[%s1339_s5 + $0x78] sm:$0xff]  ;;  %v669_v5 = vld [vmem:[%s1338_s4] ss:$0 sm:$0xff] }
  0x43   : > { %818 = vmatpush3.bf16.msra.mxu0 %v817_v22  ;;  %v865_v4 = vpack.c.bf16 %v493_v3, %v492_v2  ;;  %v670_v10 = vld [vmem:[%s1340_s6] ss:$0 sm:$0xff]  ;;  %p959_p12 = pneg %p958_p10 }
  0x44   : > { %843 = vmatprep.subr.bf16.mxu0 %v1027_v0 }
  0x45   : > { %830 = vmatpush3.bf16.msra.mxu1 %v829_v25  ;;  %p966_p7 = pnand %p965_p4, %p959_p12 }
  0x46   : > { %735 = vmatmul.mubr.msk.f32.vlgmr.msra.gmra.mrb[0].mxu0 %vm305_vm1, %v289_v26  ;;  %831 = vmatprep.subr.bf16.mxu1 %v1027_v0 }
  0x47   : > { %804 = vmatprep.mubr.msk.f32.mxu0 %vm1028_vm0, %v1029_v1  ;;  %845 = vmatpush3.bf16.msra.mxu0 %v844_v42  ;;  %v862_v1 = vpack.c.bf16 %v491_v63, %v490_v62 }
  0x48   : > { %846 = vmatprep.subr.bf16.mxu0 %v1027_v0 }
  0x49   : > { %833 = vmatpush3.bf16.msra.mxu1 %v832_v29 }
  0x4a   : > { %834 = vmatprep.subr.bf16.mxu1 %v1027_v0 }
  0x4b   : > { %848 = vmatpush3.bf16.msra.mxu0 %v847_v44 }
  0x4c   : > { %849 = vmatprep.subr.bf16.mxu0 %v1027_v0 }
  0x4d   : > { %836 = vmatpush3.bf16.msra.mxu1 %v835_v32 }
  0x4e   : > { %837 = vmatprep.subr.bf16.mxu1 %v1027_v0 }
  0x4f   : > { %851 = vmatpush3.bf16.msra.mxu0 %v850_v47 }
  0x50   : > { %852 = vmatprep.subr.bf16.mxu0 %v1027_v0 }
  0x51   : > { %839 = vmatpush3.bf16.msra.mxu1 %v838_v35 }
  0x52   : > { %840 = vmatprep.subr.bf16.mxu1 %v1027_v0 }
  0x53   : > { %854 = vmatpush3.bf16.msra.mxu0 %v853_v50 }
  0x54   : > { %855 = vmatprep.subr.bf16.mxu0 %v1027_v0 }
  0x55   : > { %842 = vmatpush3.bf16.msra.mxu1 %v841_v38 }
  0x57   : > { %857 = vmatpush3.bf16.msra.mxu0 %v856_v53 }
  0x58   : > { %858 = vmatprep.subr.bf16.mxu0 %v1027_v0 }
  0x5b   : > { %860 = vmatpush3.bf16.msra.mxu0 %v859_v61 }
  0x5c   : > { %861 = vmatprep.subr.bf16.mxu0 %v1027_v0 }
  0x5f   : > { %863 = vmatpush3.bf16.msra.mxu0 %v862_v1 }
  0x60   : > { %864 = vmatprep.subr.bf16.mxu0 %v1027_v0 }
  0x63   : > { %866 = vmatpush3.bf16.msra.mxu0 %v865_v4 }
 0x119   : > { %v375_v55 = vpop.f32.mrb[0].mxu0 }
 0x11a   : > { %v376_v56 = vadd.f32 %v667_v54, %v375_v55  ;;  %v736_v57 = vpop.f32.mrb[1].mxu0 }
 0x11c   : > { %922 = vtanh.f32 %v376_v56 }
 0x126   : > { %v923_v58 = vpop.eup %922 }
 0x127   : > { %770 = vmatmul.mubr.f32.vlgmr.msra.gmra.mrb[0].mxu1 %v923_v58 }
 0x1fa   : > { %v471_v6 = vpop.f32.mrb[0].mxu1 }
 0x1fb   : > { %v472_v7 = vadd.f32 %v669_v5, %v471_v6  ;;  %v771_v8 = vpop.f32.mrb[1].mxu1 }
 0x1fd   : > { %924 = vtanh.f32 %v472_v7 }
 0x207   : > { %v925_v9 = vpop.eup %924 }
 0x208   : > { %805 = vmatmul.mubr.f32.vlgmr.msra.gmra.mrb[2].mxu0 %v925_v9 }
 0x2db   : > { %v567_v11 = vpop.f32.mrb[2].mxu0 }
 0x2dc   : > { %v568_v0 = vadd.f32 %v670_v10, %v567_v11  ;;  %v806_v12 = vpop.f32.mrb[3].mxu0 }
 0x2de   : > { %926 = vtanh.f32 %v568_v0 }
 0x2e8   : > { %v927_v13 = vpop.eup %926 }
 0x2e9   : > { %573 = vst.msk [vmem:[%s284_s23] sm:$0xff] %vm572_vm2, %v927_v13 }
 0x2ea   : > { %969 = shalt.err (!%p966_p7)
}
 0x2eb   : > { %s970_s18 = scalar_lea.hbm %s1292_s14, 128  ;;  %s974_s21 = scalar_lea.hbm %s1341_s7, 256 }
 0x2ec   : > { %p971_p8 = scmp.ne.s32.totalorder %s1292_s14, %s970_s18  ;;  %p975_p1 = scmp.lt.u32.totalorder %s1292_s14, %s1341_s7 }
 0x2ed   : > { %p976_p0 = scmp.lt.u32.totalorder %s974_s21, %s970_s18  ;;  %p978_p6 = scmp.lt.u32.totalorder %s970_s18, %s1292_s14 }
 0x2ee   : > { %p972_p11 = pnand %p971_p8, %p1352_p9 }
 0x2ef   : > { %p977_p5 = por %p976_p0, %p975_p1 }
 0x2f0   : > { %p973_p13 = pneg %p972_p11 }
 0x2f1   : > { %p979_p10 = por %p978_p6, %p977_p5 }
 0x2f3   : > { %p980_p12 = pnand %p979_p10, %p973_p13 }
 0x2f5   : > { %983 = shalt.err (!%p980_p12)
}
 0x2f6   : > { %871 = dma.vmem_to_hbm [thread:$0]  (%p1352_p9), %s1294_s29, 128, %s1292_s14, %s575_s17  }
 0x2f7 PF: > { %p883_p2 = scmp.ge.s32.totalorder %s1022_s27, 2  ;;  %s600_s8 = sand.u32 1, %s1010_s24  }
 0x2f8   : > { %p1353_p3 = scmp.ne.s32.totalorder %s1346_s12, 0  ;;  %s601_s9 = scalar_lea.sflag [#allocation5], %s600_s8 }
 0x2fa   : > { %p878_p4 = pnand %p883_p2, %p1353_p3 }
 0x2fc   : > { %1005 = dma.done.wait (!%p878_p4), %s601_s9, 128  }
 0x2fd   : > { %1007 = vsyncadd (!%p878_p4), %s601_s9, 4294967168  ;;  %p18_p7 = scmp.ge.s32.totalorder %s1096_s30, 4   ;;  %s1354_s24 = smov %s1014_s25 }
 0x2fe   : > { %s1355_s25 = smov %s1018_s26  ;;  %s1356_s26 = smov %s1107_s10 }
 0x2ff   : > { %s1357_s27 = smov %s1096_s30  ;;  %20 = sbr.rel (!%p18_p7) target bundleno = 4 (0x4), region = 88 }
 0x306   :  { %606 = vsyncpa [#allocation4], 1 }
 0x307   :  { %608 = vsyncpa [#allocation4 + $0x1], 1 }
 0x308   :  { %609 = vsyncpa [#allocation5], 1 }
 0x309   :  { %611 = vsyncpa [#allocation5 + $0x1], 1 }

</bundles_post_ra>
